<compile_context>
chip_gen: v5e
topology: v5e:2x2
jax: 0.10.0
libtpu: 0.0.40
codegen_flags: <defaults>
</compile_context>

<pallas_src>
import jax
import jax.numpy as jnp
from jax.experimental import pallas as pl
from jax.experimental.pallas import tpu as pltpu


def disc_loss_kernel(real_ref, fake_ref, w_ref, b_ref, out_ref):
    # real_ref / fake_ref : (B, C, tile_s) VMEM blocks in native NCHW order
    #                       (channels on sublanes, spatial on lanes).
    # w_ref               : (1, C) SMEM — per-channel weights of the 1x1 conv head.
    # b_ref               : (1, 2) SMEM — [bias, bias - 1] (LSGAN targets folded in).
    # out_ref             : (1, 1) SMEM — this tile's partial sum of squared errors.
    C = real_ref.shape[1]

    real = real_ref[...]          # native dtype; upcast happens per channel slice
    fake = fake_ref[...]

    # Unrolled per-channel MAC with scalar weights (plain per-lane VALU ops,
    # no broadcast materialization, no cross-sublane reduce).
    w0 = w_ref[0, 0]
    d_real = real[:, 0, :].astype(jnp.float32) * w0
    d_fake = fake[:, 0, :].astype(jnp.float32) * w0
    for c in range(1, C):
        wc = w_ref[0, c]
        d_real = d_real + real[:, c, :].astype(jnp.float32) * wc
        d_fake = d_fake + fake[:, c, :].astype(jnp.float32) * wc

    d_fake = d_fake + b_ref[0, 0]     # bias          (target 0 folded in)
    d_real = d_real + b_ref[0, 1]     # bias - 1      (target 1 folded in)

    err = d_fake * d_fake + d_real * d_real          # (B, tile_s)
    out_ref[0, 0] = jnp.sum(err)


def _round_up(x, m):
    return -(-x // m) * m


def _pick_tile(S, B, C, itemsize, block_budget_bytes):
    """Pick (tile_s, s_pad): lane-dense spatial tile + padded spatial extent.

    Accounts for sublane padding of C, 2 inputs x 2 pipeline buffers, and the
    f32 intermediates the kernel creates, so the selected tile matches what
    Mosaic actually allocates in VMEM.
    """
    sub = 8 * max(1, 4 // itemsize)          # f32 -> 8, bf16 -> 16, int8 -> 32 sublanes
    c_pad = _round_up(C, sub)
    # Per spatial column (one lane): 2 inputs x 2 double-buffers of the padded
    # (B, c_pad) block + ~4 f32 (B,) intermediates (d_real, d_fake, err, temp).
    per_lane = 2 * 2 * B * c_pad * itemsize + 4 * B * 4
    max_tile = max(128, (block_budget_bytes // per_lane) // 128 * 128)

    s128 = _round_up(S, 128)
    if s128 <= max_tile:
        return s128, s128                    # single lane-dense tile

    # Prefer the largest 128-multiple divisor of the 128-padded extent that
    # fits the budget (zero extra padding).
    best_div = max((t for t in range(128, max_tile + 1, 128) if s128 % t == 0),
                   default=128)
    if best_div >= max(512, max_tile // 4):
        return best_div, s128

    # No good divisor: keep tiles large (near HBM roofline) and accept bounded
    # zero-padding of the tail; the padded contribution is removed analytically
    # in the wrapper.
    return max_tile, _round_up(S, max_tile)


def discriminator_loss(real_nchw, fake_nchw, w, b, *, block_budget_bytes=8 << 20):
    """CycleGAN DiscriminatorLoss with netD = 1x1-conv head, MSE (LSGAN) criterion."""
    B, C, H, W = real_nchw.shape
    assert fake_nchw.shape == real_nchw.shape
    S = H * W
    M = B * S                                 # number of D-output elements

    # Free, contiguous views — no transpose, no dtype cast in the wrapper.
    real = real_nchw.reshape(B, C, S)
    fake = fake_nchw.reshape(B, C, S)

    w2 = jnp.asarray(w, jnp.float32).reshape(1, C)
    b_scalar = jnp.asarray(b, jnp.float32).reshape(())
    # Fold LSGAN targets into the bias: fake target 0 -> b, real target 1 -> b - 1.
    b2 = jnp.stack([b_scalar, b_scalar - 1.0]).reshape(1, 2)

    itemsize = real.dtype.itemsize
    tile_s, s_pad = _pick_tile(S, B, C, itemsize, block_budget_bytes)
    assert s_pad % tile_s == 0 and tile_s % 128 == 0
    num_tiles = s_pad // tile_s
    pad = s_pad - S
    if pad:
        real = jnp.pad(real, ((0, 0), (0, 0), (0, pad)))
        fake = jnp.pad(fake, ((0, 0), (0, 0), (0, pad)))

    cost = pl.CostEstimate(
        flops=int((4 * C + 6) * B * s_pad),
        transcendentals=0,
        bytes_accessed=int(2 * B * C * s_pad * itemsize + 4 * num_tiles + 4 * (C + 2)),
    )

    def build(dim_sem):
        return pl.pallas_call(
            disc_loss_kernel,
            out_shape=jax.ShapeDtypeStruct((num_tiles, 1), jnp.float32),
            grid_spec=pltpu.PrefetchScalarGridSpec(
                num_scalar_prefetch=0,
                grid=(num_tiles,),
                in_specs=[
                    pl.BlockSpec((B, C, tile_s), lambda i: (0, 0, i)),   # real tile
                    pl.BlockSpec((B, C, tile_s), lambda i: (0, 0, i)),   # fake tile
                    pl.BlockSpec((1, C), lambda i: (0, 0),
                                 memory_space=pltpu.MemorySpace.SMEM),   # weights
                    pl.BlockSpec((1, 2), lambda i: (0, 0),
                                 memory_space=pltpu.MemorySpace.SMEM),   # biases
                ],
                out_specs=pl.BlockSpec((1, 1), lambda i: (i, 0),
                                       memory_space=pltpu.MemorySpace.SMEM),
            ),
            compiler_params=pltpu.CompilerParams(
                dimension_semantics=(dim_sem,),
                vmem_limit_bytes=32 << 20),
            cost_estimate=cost,
        )

    try:
        # v7x megacore: shard the tile stream across both TensorCores.
        partials = build(pltpu.CORE_PARALLEL)(real, fake, w2, b2)
    except Exception:
        # Single-core chips / runtimes that reject CORE_PARALLEL.
        partials = build("parallel")(real, fake, w2, b2)

    total = jnp.sum(partials)
    if pad:
        # Zero-padded pixels contribute exactly b^2 (fake) + (b-1)^2 (real) each.
        total = total - B * pad * (b_scalar ** 2 + (b_scalar - 1.0) ** 2)

    # (mean_fake + mean_real) / 2 == (sum_fake + sum_real) / (2 * M)
    return total / (2.0 * M)


if __name__ == "__main__":
    key = jax.random.PRNGKey(0)
    k1, k2, k3, k4 = jax.random.split(key, 4)

    B, C, H, W = 2, 4, 16, 16
    real = jax.random.normal(k1, (B, C, H, W), jnp.float32)
    fake = jax.random.normal(k2, (B, C, H, W), jnp.float32)

    # Deterministic synthetic netD parameters (1x1 conv, out_channels=1).
    # TODO(synk): the PyTorch module takes an arbitrary netD; only a 1x1-conv
    # PatchGAN head is modeled here.
    w = jax.random.normal(k3, (C,), jnp.float32) * 0.1
    b = jax.random.normal(k4, (), jnp.float32) * 0.1

    loss = discriminator_loss(real, fake, w, b)
    loss = jax.block_until_ready(loss)

    # Pure-JAX reference of the same forward semantics.
    def net_d(x):
        return jnp.einsum("bchw,c->bhw", x, w) + b

    d_fake = net_d(fake)
    d_real = net_d(real)
    ref = (jnp.mean(d_fake ** 2) + jnp.mean((d_real - 1.0) ** 2)) / 2.0

    assert jnp.allclose(loss, ref, atol=1e-5, rtol=1e-5), (loss, ref)
    print("KERNEL_OK")
</pallas_src>

<mosaic_0001>
module attributes {stable_mosaic.version = 11 : i64} {
  func.func @disc_loss_kernel(%arg0: i32, %arg1: memref<2x4x256xf32, #tpu.memory_space<vmem>>, %arg2: memref<2x4x256xf32, #tpu.memory_space<vmem>>, %arg3: memref<1x4xf32, #tpu.memory_space<smem>>, %arg4: memref<1x2xf32, #tpu.memory_space<smem>>, %arg5: memref<1x1xf32, #tpu.memory_space<smem>>) attributes {dimension_semantics = [#tpu.dimension_semantics<core_parallel>], iteration_bounds = array<i64: 1>, scalar_prefetch = 0 : i64, scratch_operands = 0 : i64, tpu.core_type = #tpu.core_type<tc>, window_params = [{transform_indices = @transform_0, window_bounds = array<i64: 2, 4, 256>}, {transform_indices = @transform_1, window_bounds = array<i64: 2, 4, 256>}, {transform_indices = @transform_2, window_bounds = array<i64: 1, 4>}, {transform_indices = @transform_3, window_bounds = array<i64: 1, 2>}, {transform_indices = @transform_4, window_bounds = array<i64: 1, 1>}]} {
    %c0 = arith.constant 0 : index
    %c0_0 = arith.constant 0 : index
    %c0_1 = arith.constant 0 : index
    %0 = vector.load %arg1[%c0, %c0_0, %c0_1] : memref<2x4x256xf32, #tpu.memory_space<vmem>>, vector<2x4x256xf32>
    %c0_2 = arith.constant 0 : index
    %c0_3 = arith.constant 0 : index
    %c0_4 = arith.constant 0 : index
    %1 = vector.load %arg2[%c0_2, %c0_3, %c0_4] : memref<2x4x256xf32, #tpu.memory_space<vmem>>, vector<2x4x256xf32>
    %c0_5 = arith.constant 0 : index
    %c0_6 = arith.constant 0 : index
    %2 = memref.load %arg3[%c0_5, %c0_6] : memref<1x4xf32, #tpu.memory_space<smem>>
    %3 = vector.extract_strided_slice %0 {offsets = [0, 0, 0], sizes = [2, 1, 256], strides = [1, 1, 1]} : vector<2x4x256xf32> to vector<2x1x256xf32>
    %4 = vector.shape_cast %3 : vector<2x1x256xf32> to vector<2x256xf32>
    %5 = vector.broadcast %2 : f32 to vector<2x256xf32>
    %6 = arith.mulf %4, %5 : vector<2x256xf32>
    %7 = vector.extract_strided_slice %1 {offsets = [0, 0, 0], sizes = [2, 1, 256], strides = [1, 1, 1]} : vector<2x4x256xf32> to vector<2x1x256xf32>
    %8 = vector.shape_cast %7 : vector<2x1x256xf32> to vector<2x256xf32>
    %9 = vector.broadcast %2 : f32 to vector<2x256xf32>
    %10 = arith.mulf %8, %9 : vector<2x256xf32>
    %c0_7 = arith.constant 0 : index
    %c1 = arith.constant 1 : index
    %11 = memref.load %arg3[%c0_7, %c1] : memref<1x4xf32, #tpu.memory_space<smem>>
    %12 = vector.extract_strided_slice %0 {offsets = [0, 1, 0], sizes = [2, 1, 256], strides = [1, 1, 1]} : vector<2x4x256xf32> to vector<2x1x256xf32>
    %13 = vector.shape_cast %12 : vector<2x1x256xf32> to vector<2x256xf32>
    %14 = vector.broadcast %11 : f32 to vector<2x256xf32>
    %15 = arith.mulf %13, %14 : vector<2x256xf32>
    %16 = arith.addf %6, %15 : vector<2x256xf32>
    %17 = vector.extract_strided_slice %1 {offsets = [0, 1, 0], sizes = [2, 1, 256], strides = [1, 1, 1]} : vector<2x4x256xf32> to vector<2x1x256xf32>
    %18 = vector.shape_cast %17 : vector<2x1x256xf32> to vector<2x256xf32>
    %19 = vector.broadcast %11 : f32 to vector<2x256xf32>
    %20 = arith.mulf %18, %19 : vector<2x256xf32>
    %21 = arith.addf %10, %20 : vector<2x256xf32>
    %c0_8 = arith.constant 0 : index
    %c2 = arith.constant 2 : index
    %22 = memref.load %arg3[%c0_8, %c2] : memref<1x4xf32, #tpu.memory_space<smem>>
    %23 = vector.extract_strided_slice %0 {offsets = [0, 2, 0], sizes = [2, 1, 256], strides = [1, 1, 1]} : vector<2x4x256xf32> to vector<2x1x256xf32>
    %24 = vector.shape_cast %23 : vector<2x1x256xf32> to vector<2x256xf32>
    %25 = vector.broadcast %22 : f32 to vector<2x256xf32>
    %26 = arith.mulf %24, %25 : vector<2x256xf32>
    %27 = arith.addf %16, %26 : vector<2x256xf32>
    %28 = vector.extract_strided_slice %1 {offsets = [0, 2, 0], sizes = [2, 1, 256], strides = [1, 1, 1]} : vector<2x4x256xf32> to vector<2x1x256xf32>
    %29 = vector.shape_cast %28 : vector<2x1x256xf32> to vector<2x256xf32>
    %30 = vector.broadcast %22 : f32 to vector<2x256xf32>
    %31 = arith.mulf %29, %30 : vector<2x256xf32>
    %32 = arith.addf %21, %31 : vector<2x256xf32>
    %c0_9 = arith.constant 0 : index
    %c3 = arith.constant 3 : index
    %33 = memref.load %arg3[%c0_9, %c3] : memref<1x4xf32, #tpu.memory_space<smem>>
    %34 = vector.extract_strided_slice %0 {offsets = [0, 3, 0], sizes = [2, 1, 256], strides = [1, 1, 1]} : vector<2x4x256xf32> to vector<2x1x256xf32>
    %35 = vector.shape_cast %34 : vector<2x1x256xf32> to vector<2x256xf32>
    %36 = vector.broadcast %33 : f32 to vector<2x256xf32>
    %37 = arith.mulf %35, %36 : vector<2x256xf32>
    %38 = arith.addf %27, %37 : vector<2x256xf32>
    %39 = vector.extract_strided_slice %1 {offsets = [0, 3, 0], sizes = [2, 1, 256], strides = [1, 1, 1]} : vector<2x4x256xf32> to vector<2x1x256xf32>
    %40 = vector.shape_cast %39 : vector<2x1x256xf32> to vector<2x256xf32>
    %41 = vector.broadcast %33 : f32 to vector<2x256xf32>
    %42 = arith.mulf %40, %41 : vector<2x256xf32>
    %43 = arith.addf %32, %42 : vector<2x256xf32>
    %c0_10 = arith.constant 0 : index
    %c0_11 = arith.constant 0 : index
    %44 = memref.load %arg4[%c0_10, %c0_11] : memref<1x2xf32, #tpu.memory_space<smem>>
    %45 = vector.broadcast %44 : f32 to vector<2x256xf32>
    %46 = arith.addf %43, %45 : vector<2x256xf32>
    %c0_12 = arith.constant 0 : index
    %c1_13 = arith.constant 1 : index
    %47 = memref.load %arg4[%c0_12, %c1_13] : memref<1x2xf32, #tpu.memory_space<smem>>
    %48 = vector.broadcast %47 : f32 to vector<2x256xf32>
    %49 = arith.addf %38, %48 : vector<2x256xf32>
    %50 = arith.mulf %46, %46 : vector<2x256xf32>
    %51 = arith.mulf %49, %49 : vector<2x256xf32>
    %52 = arith.addf %50, %51 : vector<2x256xf32>
    %53 = vector.shape_cast %52 : vector<2x256xf32> to vector<1x2x256xf32>
    %cst = arith.constant dense<0.000000e+00> : vector<1xf32>
    %54 = vector.multi_reduction <add>, %53, %cst [1, 2] : vector<1x2x256xf32> to vector<1xf32>
    %55 = vector.shape_cast %54 : vector<1xf32> to vector<1x1x1xf32>
    %56 = vector.extract %55[0, 0, 0] : f32 from vector<1x1x1xf32>
    %c0_14 = arith.constant 0 : index
    %c0_15 = arith.constant 0 : index
    %57 = memref.load %arg5[%c0_14, %c0_15] : memref<1x1xf32, #tpu.memory_space<smem>>
    memref.store %56, %arg5[%c0_14, %c0_15] : memref<1x1xf32, #tpu.memory_space<smem>>
    return
  }
  func.func @transform_0(%arg0: i32) -> (i32, i32, i32) {
    %c0_i32 = arith.constant 0 : i32
    %c0_i32_0 = arith.constant 0 : i32
    %c0_i32_1 = arith.constant 0 : i32
    return %c0_i32, %c0_i32_0, %arg0 : i32, i32, i32
  }
  func.func @transform_1(%arg0: i32) -> (i32, i32, i32) {
    %c0_i32 = arith.constant 0 : i32
    %c0_i32_0 = arith.constant 0 : i32
    %c0_i32_1 = arith.constant 0 : i32
    return %c0_i32, %c0_i32_0, %arg0 : i32, i32, i32
  }
  func.func @transform_2(%arg0: i32) -> (i32, i32) {
    %c0_i32 = arith.constant 0 : i32
    %c0_i32_0 = arith.constant 0 : i32
    %c0_i32_1 = arith.constant 0 : i32
    return %c0_i32, %c0_i32_0 : i32, i32
  }
  func.func @transform_3(%arg0: i32) -> (i32, i32) {
    %c0_i32 = arith.constant 0 : i32
    %c0_i32_0 = arith.constant 0 : i32
    %c0_i32_1 = arith.constant 0 : i32
    return %c0_i32, %c0_i32_0 : i32, i32
  }
  func.func @transform_4(%arg0: i32) -> (i32, i32) {
    %c0_i32 = arith.constant 0 : i32
    %c0_i32_0 = arith.constant 0 : i32
    return %arg0, %c0_i32 : i32, i32
  }
}

module attributes {stable_mosaic.version = 11 : i64} {
  func.func @disc_loss_kernel(%arg0: i32, %arg1: memref<2x4x256xf32, #tpu.memory_space<vmem>>, %arg2: memref<2x4x256xf32, #tpu.memory_space<vmem>>, %arg3: memref<1x4xf32, #tpu.memory_space<smem>>, %arg4: memref<1x2xf32, #tpu.memory_space<smem>>, %arg5: memref<1x1xf32, #tpu.memory_space<smem>>) attributes {dimension_semantics = [#tpu.dimension_semantics<parallel>], iteration_bounds = array<i64: 1>, scalar_prefetch = 0 : i64, scratch_operands = 0 : i64, tpu.core_type = #tpu.core_type<tc>, window_params = [{transform_indices = @transform_0, window_bounds = array<i64: 2, 4, 256>}, {transform_indices = @transform_1, window_bounds = array<i64: 2, 4, 256>}, {transform_indices = @transform_2, window_bounds = array<i64: 1, 4>}, {transform_indices = @transform_3, window_bounds = array<i64: 1, 2>}, {transform_indices = @transform_4, window_bounds = array<i64: 1, 1>}]} {
    %c0 = arith.constant 0 : index
    %c0_0 = arith.constant 0 : index
    %c0_1 = arith.constant 0 : index
    %0 = vector.load %arg1[%c0, %c0_0, %c0_1] : memref<2x4x256xf32, #tpu.memory_space<vmem>>, vector<2x4x256xf32>
    %c0_2 = arith.constant 0 : index
    %c0_3 = arith.constant 0 : index
    %c0_4 = arith.constant 0 : index
    %1 = vector.load %arg2[%c0_2, %c0_3, %c0_4] : memref<2x4x256xf32, #tpu.memory_space<vmem>>, vector<2x4x256xf32>
    %c0_5 = arith.constant 0 : index
    %c0_6 = arith.constant 0 : index
    %2 = memref.load %arg3[%c0_5, %c0_6] : memref<1x4xf32, #tpu.memory_space<smem>>
    %3 = vector.extract_strided_slice %0 {offsets = [0, 0, 0], sizes = [2, 1, 256], strides = [1, 1, 1]} : vector<2x4x256xf32> to vector<2x1x256xf32>
    %4 = vector.shape_cast %3 : vector<2x1x256xf32> to vector<2x256xf32>
    %5 = vector.broadcast %2 : f32 to vector<2x256xf32>
    %6 = arith.mulf %4, %5 : vector<2x256xf32>
    %7 = vector.extract_strided_slice %1 {offsets = [0, 0, 0], sizes = [2, 1, 256], strides = [1, 1, 1]} : vector<2x4x256xf32> to vector<2x1x256xf32>
    %8 = vector.shape_cast %7 : vector<2x1x256xf32> to vector<2x256xf32>
    %9 = vector.broadcast %2 : f32 to vector<2x256xf32>
    %10 = arith.mulf %8, %9 : vector<2x256xf32>
    %c0_7 = arith.constant 0 : index
    %c1 = arith.constant 1 : index
    %11 = memref.load %arg3[%c0_7, %c1] : memref<1x4xf32, #tpu.memory_space<smem>>
    %12 = vector.extract_strided_slice %0 {offsets = [0, 1, 0], sizes = [2, 1, 256], strides = [1, 1, 1]} : vector<2x4x256xf32> to vector<2x1x256xf32>
    %13 = vector.shape_cast %12 : vector<2x1x256xf32> to vector<2x256xf32>
    %14 = vector.broadcast %11 : f32 to vector<2x256xf32>
    %15 = arith.mulf %13, %14 : vector<2x256xf32>
    %16 = arith.addf %6, %15 : vector<2x256xf32>
    %17 = vector.extract_strided_slice %1 {offsets = [0, 1, 0], sizes = [2, 1, 256], strides = [1, 1, 1]} : vector<2x4x256xf32> to vector<2x1x256xf32>
    %18 = vector.shape_cast %17 : vector<2x1x256xf32> to vector<2x256xf32>
    %19 = vector.broadcast %11 : f32 to vector<2x256xf32>
    %20 = arith.mulf %18, %19 : vector<2x256xf32>
    %21 = arith.addf %10, %20 : vector<2x256xf32>
    %c0_8 = arith.constant 0 : index
    %c2 = arith.constant 2 : index
    %22 = memref.load %arg3[%c0_8, %c2] : memref<1x4xf32, #tpu.memory_space<smem>>
    %23 = vector.extract_strided_slice %0 {offsets = [0, 2, 0], sizes = [2, 1, 256], strides = [1, 1, 1]} : vector<2x4x256xf32> to vector<2x1x256xf32>
    %24 = vector.shape_cast %23 : vector<2x1x256xf32> to vector<2x256xf32>
    %25 = vector.broadcast %22 : f32 to vector<2x256xf32>
    %26 = arith.mulf %24, %25 : vector<2x256xf32>
    %27 = arith.addf %16, %26 : vector<2x256xf32>
    %28 = vector.extract_strided_slice %1 {offsets = [0, 2, 0], sizes = [2, 1, 256], strides = [1, 1, 1]} : vector<2x4x256xf32> to vector<2x1x256xf32>
    %29 = vector.shape_cast %28 : vector<2x1x256xf32> to vector<2x256xf32>
    %30 = vector.broadcast %22 : f32 to vector<2x256xf32>
    %31 = arith.mulf %29, %30 : vector<2x256xf32>
    %32 = arith.addf %21, %31 : vector<2x256xf32>
    %c0_9 = arith.constant 0 : index
    %c3 = arith.constant 3 : index
    %33 = memref.load %arg3[%c0_9, %c3] : memref<1x4xf32, #tpu.memory_space<smem>>
    %34 = vector.extract_strided_slice %0 {offsets = [0, 3, 0], sizes = [2, 1, 256], strides = [1, 1, 1]} : vector<2x4x256xf32> to vector<2x1x256xf32>
    %35 = vector.shape_cast %34 : vector<2x1x256xf32> to vector<2x256xf32>
    %36 = vector.broadcast %33 : f32 to vector<2x256xf32>
    %37 = arith.mulf %35, %36 : vector<2x256xf32>
    %38 = arith.addf %27, %37 : vector<2x256xf32>
    %39 = vector.extract_strided_slice %1 {offsets = [0, 3, 0], sizes = [2, 1, 256], strides = [1, 1, 1]} : vector<2x4x256xf32> to vector<2x1x256xf32>
    %40 = vector.shape_cast %39 : vector<2x1x256xf32> to vector<2x256xf32>
    %41 = vector.broadcast %33 : f32 to vector<2x256xf32>
    %42 = arith.mulf %40, %41 : vector<2x256xf32>
    %43 = arith.addf %32, %42 : vector<2x256xf32>
    %c0_10 = arith.constant 0 : index
    %c0_11 = arith.constant 0 : index
    %44 = memref.load %arg4[%c0_10, %c0_11] : memref<1x2xf32, #tpu.memory_space<smem>>
    %45 = vector.broadcast %44 : f32 to vector<2x256xf32>
    %46 = arith.addf %43, %45 : vector<2x256xf32>
    %c0_12 = arith.constant 0 : index
    %c1_13 = arith.constant 1 : index
    %47 = memref.load %arg4[%c0_12, %c1_13] : memref<1x2xf32, #tpu.memory_space<smem>>
    %48 = vector.broadcast %47 : f32 to vector<2x256xf32>
    %49 = arith.addf %38, %48 : vector<2x256xf32>
    %50 = arith.mulf %46, %46 : vector<2x256xf32>
    %51 = arith.mulf %49, %49 : vector<2x256xf32>
    %52 = arith.addf %50, %51 : vector<2x256xf32>
    %53 = vector.shape_cast %52 : vector<2x256xf32> to vector<1x2x256xf32>
    %cst = arith.constant dense<0.000000e+00> : vector<1xf32>
    %54 = vector.multi_reduction <add>, %53, %cst [1, 2] : vector<1x2x256xf32> to vector<1xf32>
    %55 = vector.shape_cast %54 : vector<1xf32> to vector<1x1x1xf32>
    %56 = vector.extract %55[0, 0, 0] : f32 from vector<1x1x1xf32>
    %c0_14 = arith.constant 0 : index
    %c0_15 = arith.constant 0 : index
    %57 = memref.load %arg5[%c0_14, %c0_15] : memref<1x1xf32, #tpu.memory_space<smem>>
    memref.store %56, %arg5[%c0_14, %c0_15] : memref<1x1xf32, #tpu.memory_space<smem>>
    return
  }
  func.func @transform_0(%arg0: i32) -> (i32, i32, i32) {
    %c0_i32 = arith.constant 0 : i32
    %c0_i32_0 = arith.constant 0 : i32
    %c0_i32_1 = arith.constant 0 : i32
    return %c0_i32, %c0_i32_0, %arg0 : i32, i32, i32
  }
  func.func @transform_1(%arg0: i32) -> (i32, i32, i32) {
    %c0_i32 = arith.constant 0 : i32
    %c0_i32_0 = arith.constant 0 : i32
    %c0_i32_1 = arith.constant 0 : i32
    return %c0_i32, %c0_i32_0, %arg0 : i32, i32, i32
  }
  func.func @transform_2(%arg0: i32) -> (i32, i32) {
    %c0_i32 = arith.constant 0 : i32
    %c0_i32_0 = arith.constant 0 : i32
    %c0_i32_1 = arith.constant 0 : i32
    return %c0_i32, %c0_i32_0 : i32, i32
  }
  func.func @transform_3(%arg0: i32) -> (i32, i32) {
    %c0_i32 = arith.constant 0 : i32
    %c0_i32_0 = arith.constant 0 : i32
    %c0_i32_1 = arith.constant 0 : i32
    return %c0_i32, %c0_i32_0 : i32, i32
  }
  func.func @transform_4(%arg0: i32) -> (i32, i32) {
    %c0_i32 = arith.constant 0 : i32
    %c0_i32_0 = arith.constant 0 : i32
    return %arg0, %c0_i32 : i32, i32
  }
}

</mosaic_0001>

<bundles_post_ra>
// kernel: tpu_custom_call.1
= control target key start
LH: loop header
LB: loop body
LE: loop exit
PB: predicated region body
PF: predicated region fallthrough
CT: control target
= control target key end

     0   :  { %s393_s15 = sld [smem:[#allocation0]]   ;;  %s427_s0 = inlined_call_operand.hbm [shape: f32[2,4,256], index: 0, kind: input, shape index: {}]   ;;  %s428_s1 = inlined_call_operand.hbm [shape: f32[2,4,256], index: 1, kind: input, shape index: {}]   ;;  %s429_s2 = inlined_call_operand.vmem [shape: f32[1,4], index: 2, kind: input, shape index: {}]   ;;  %s430_s3 = inlined_call_operand.vmem [shape: f32[1,2], index: 3, kind: input, shape index: {}]   ;;  %s431_s4 = inlined_call_operand.hbm [shape: f32[1,1], index: 4, kind: output, shape index: {}]  }
   0x1   :  { %9 = vsyncpa [#allocation3], 0 }
   0x2   :  { %10 = vsyncpa [#allocation7], 0 }
   0x3   :  { %11 = vsyncpa [#allocation5], 0 }
   0x4   :  { %12 = vsyncpa [#allocation10], 0 }
   0x5   :  { %13 = vsyncpa [#allocation4], 0  ;;  %s361_s20 = smov [#allocation2]   ;;  %s271_s30 = scalar_lea.hbm %s427_s0, 16 }
   0x6   :  { %s256_s16 = sshll.u32 %s393_s15, 3  ;;  %s23_s21 = sshll.u32 %s361_s20, 4  ;;  %s24_s21 = int_to_ptr.vmem [resolvable:$true] %s23_s21 }
   0x7   :  { %s20_s19 = scalar_lea.hbm %s427_s0, %s256_s16  ;;  %s36_s25 = scalar_lea.hbm %s428_s1, %s256_s16 }
   0x8   :  { %s21_s22 = sshll.u32 %s20_s19, 4  ;;  %s22_s22 = int_to_ptr.hbm [resolvable:$true] %s21_s22 }
   0x9   :  { %s267_s26 = sshra.s32 %s22_s22, 4  ;;  %s268_s26 = int_to_ptr.hbm [resolvable:$true] %s267_s26 }
   0xa   :  { %s269_s27 = scalar_lea.hbm %s268_s26, 16 }
   0xb   :  { %p270_p0 = scmp.ne.s32.totalorder %s268_s26, %s269_s27  ;;  %p273_p1 = scmp.lt.s32.totalorder %s271_s30, %s269_s27 }
   0xd   :  { %p275_p2 = pnand %p273_p1, %p270_p0 }
   0xf   :  { %278 = shalt.err (!%p275_p2)
}
  0x10   :  { %s362_s5 = smov 128   ;;  %s363_s6 = smov 8  }
  0x11   :  { %29 = dma.hbm_to_vmem [thread:$0]  %s22_s22, 256, %s24_s21, [#allocation3], %s362_s5, %s362_s5, %s363_s6  }
  0x12   :  { %s37_s7 = sshll.u32 %s36_s25, 4  ;;  %s364_s8 = smov [#allocation6]   ;;  %s38_s7 = int_to_ptr.hbm [resolvable:$true] %s37_s7 }
  0x13   :  { %s39_s9 = sshll.u32 %s364_s8, 4  ;;  %s51_s12 = sshll.u32 %s429_s2, 4  ;;  %s40_s9 = int_to_ptr.vmem [resolvable:$true] %s39_s9  ;;  %s52_s12 = int_to_ptr.vmem [resolvable:$true] %s51_s12 }
  0x14   :  { %s291_s13 = sshra.s32 %s38_s7, 4  ;;  %s295_s17 = scalar_lea.hbm %s428_s1, 16  ;;  %s292_s13 = int_to_ptr.hbm [resolvable:$true] %s291_s13 }
  0x15   :  { %s293_s14 = scalar_lea.hbm %s292_s13, 16 }
  0x16   :  { %p294_p3 = scmp.ne.s32.totalorder %s292_s13, %s293_s14  ;;  %p297_p4 = scmp.lt.s32.totalorder %s295_s17, %s293_s14 }
  0x18   :  { %p299_p5 = pnand %p297_p4, %p294_p3 }
  0x1a   :  { %302 = shalt.err (!%p299_p5)
}
  0x1b   :  { %45 = dma.hbm_to_vmem [thread:$0]  %s38_s7, 256, %s40_s9, [#allocation7], %s362_s5, %s362_s5, %s363_s6  }
  0x1c   :  { %s365_s18 = smov [#allocation8]   ;;  %s60_s21 = sshll.u32 %s430_s3, 4  ;;  %s61_s21 = int_to_ptr.vmem [resolvable:$true] %s60_s21 }
  0x1d   :  { %54 = dma.vmem_to_smem %s52_s12, 16, %s365_s18, [#allocation5]  }
  0x1e   :  { %s366_s2 = smov [#allocation9]  }
  0x1f   :  { %63 = dma.vmem_to_smem %s61_s21, 16, %s366_s2, [#allocation10]  }
  0x20   :  { %351 = dma.done.wait [#allocation3], 256  }
  0x21   :  { %352 = vsyncadd [#allocation3], 4294967040 }
  0x22   :  { %353 = dma.done.wait [#allocation7], 256  }
  0x23   :  { %354 = vsyncadd [#allocation7], 4294967040 }
  0x24   :  { %355 = dma.done.wait [#allocation5], 16  }
  0x25   :  { %356 = vsyncadd [#allocation5], 4294967280 }
  0x26   :  { %357 = dma.done.wait [#allocation10], 16  }
  0x27   :  { %358 = vsyncadd [#allocation10], 4294967280 }
  0x28   :  { %80 = sfence }
  0x29   :  { %s87_s1 = sld [smem:[#allocation8]]  ;;  %v83_v0 = vld [vmem:[#allocation2] sm:$0xff]  ;;  %v84_v1 = vld [vmem:[#allocation2 + $0x8] sm:$0xff]  ;;  %v85_v2 = vld [vmem:[#allocation6] sm:$0xff]  ;;  %vm191_vm0 = vcmask 1041409   ;;  %vm196_vm1 = vcmask 1041408   ;;  %s215_s28 = scalar_lea.hbm %s431_s4, %s393_s15 }
  0x2a   :  { %s240_s22 = sld [smem:[#allocation8 + $0x1]]  ;;  %v86_v3 = vld [vmem:[#allocation6 + $0x8] sm:$0xff]  ;;  %s217_s29 = sshll.u32 %s215_s28, 4  ;;  %s218_s29 = int_to_ptr.hbm [resolvable:$true] %s217_s29 }
  0x2b   :  { %s245_s23 = sld [smem:[#allocation8 + $0x2]]  ;;  %s339_s5 = sshra.s32 %s218_s29, 4  ;;  %s340_s5 = int_to_ptr.hbm [resolvable:$true] %s339_s5 }
  0x2c   :  { %s250_s3 = sld [smem:[#allocation8 + $0x3]]  ;;  %s341_s6 = scalar_lea.hbm %s340_s5, 1 }
  0x2d   :  { %s414_s24 = sld [smem:[#allocation9]]  ;;  %p342_p6 = scmp.ne.s32.totalorder %s340_s5, %s341_s6 }
  0x2e   :  { %s416_s25 = sld [smem:[#allocation9 + $0x1]]  ;;  %s343_s9 = scalar_lea.hbm %s431_s4, 1 }
  0x2f   :  { %v88_v4 = vstv %s87_s1  ;;  %p345_p7 = scmp.lt.s32.totalorder %s343_s9, %s341_s6 }
  0x30   :  { %v89_v5 = vmul.f32 %v88_v4, %v83_v0  ;;  %v90_v6 = vmul.f32 %v88_v4, %v84_v1  ;;  %v91_v7 = vmul.f32 %v88_v4, %v85_v2  ;;  %v92_v8 = vmul.f32 %v88_v4, %v86_v3 }
  0x31   :  { %v94_v9 = vstv %s240_s22  ;;  %v120_v10 = vstv %s245_s23  ;;  %p347_p8 = pnand %p345_p7, %p342_p6 }
  0x32   :  { %v95_v11 = vmul.f32 %v94_v9, %v83_v0  ;;  %v96_v12 = vmul.f32 %v94_v9, %v84_v1  ;;  %v107_v13 = vmul.f32 %v94_v9, %v85_v2  ;;  %v108_v14 = vmul.f32 %v94_v9, %v86_v3 }
  0x33   :  { %v121_v15 = vmul.f32 %v120_v10, %v83_v0  ;;  %v122_v16 = vmul.f32 %v120_v10, %v84_v1  ;;  %v133_v17 = vmul.f32 %v120_v10, %v85_v2  ;;  %v134_v18 = vmul.f32 %v120_v10, %v86_v3 }
  0x34   :  { %v241_v19 = vrot.slane %v95_v11, 9  ;;  %v242_v20 = vrot.slane %v96_v12, 9  ;;  %v243_v21 = vrot.slane %v107_v13, 9  ;;  %v244_v22 = vrot.slane %v108_v14, 9 }
  0x35   :  { %v246_v23 = vrot.slane %v121_v15, 10  ;;  %v247_v24 = vrot.slane %v122_v16, 10  ;;  %v248_v25 = vrot.slane %v133_v17, 10  ;;  %v249_v26 = vrot.slane %v134_v18, 10 }
  0x36   :  { %v105_v27 = vadd.f32 %v241_v19, %v89_v5  ;;  %v106_v28 = vadd.f32 %v242_v20, %v90_v6  ;;  %v117_v29 = vadd.f32 %v243_v21, %v91_v7  ;;  %v118_v30 = vadd.f32 %v244_v22, %v92_v8 }
  0x37   :  { %v146_v31 = vstv %s250_s3  ;;  %v172_v44 = vstv %s414_s24  ;;  %v176_v45 = vstv %s416_s25 }
  0x38   :  { %v131_v32 = vadd.f32 %v246_v23, %v105_v27  ;;  %v132_v33 = vadd.f32 %v247_v24, %v106_v28  ;;  %v143_v34 = vadd.f32 %v248_v25, %v117_v29  ;;  %v144_v35 = vadd.f32 %v249_v26, %v118_v30 }
  0x39   :  { %v147_v36 = vmul.f32 %v146_v31, %v83_v0  ;;  %v148_v37 = vmul.f32 %v146_v31, %v84_v1  ;;  %v159_v38 = vmul.f32 %v146_v31, %v85_v2  ;;  %v160_v39 = vmul.f32 %v146_v31, %v86_v3 }
  0x3b   :  { %v251_v40 = vrot.slane %v147_v36, 11  ;;  %v252_v41 = vrot.slane %v148_v37, 11  ;;  %v253_v42 = vrot.slane %v159_v38, 11  ;;  %v254_v43 = vrot.slane %v160_v39, 11 }
  0x3d   :  { %v157_v46 = vadd.f32 %v251_v40, %v131_v32  ;;  %v158_v47 = vadd.f32 %v252_v41, %v132_v33  ;;  %v169_v48 = vadd.f32 %v253_v42, %v143_v34  ;;  %v170_v49 = vadd.f32 %v254_v43, %v144_v35 }
  0x3f   :  { %v173_v50 = vadd.f32 %v172_v44, %v169_v48  ;;  %v174_v51 = vadd.f32 %v172_v44, %v170_v49  ;;  %v177_v52 = vadd.f32 %v176_v45, %v157_v46  ;;  %v178_v53 = vadd.f32 %v176_v45, %v158_v47 }
  0x41   :  { %v179_v54 = vmul.f32 %v173_v50, %v173_v50  ;;  %v180_v55 = vmul.f32 %v174_v51, %v174_v51  ;;  %v181_v56 = vmul.f32 %v177_v52, %v177_v52  ;;  %v182_v57 = vmul.f32 %v178_v53, %v178_v53 }
  0x43   :  { %v183_v58 = vadd.f32 %v181_v56, %v179_v54  ;;  %v184_v59 = vadd.f32 %v182_v57, %v180_v55 }
  0x45   :  { %v187_v60 = vperm.slane %v183_v58, 0  ;;  %v188_v61 = vperm.slane %v183_v58, 4  ;;  %v189_v62 = vperm.slane %v184_v59, 0  ;;  %v190_v63 = vperm.slane %v184_v59, 4 }
  0x47   :  { %v192_v0 = vsel %vm191_vm0, %v189_v62, %v187_v60  ;;  %v193_v1 = vsel %vm191_vm0, %v190_v63, %v188_v61 }
  0x48   :  { %v197_v2 = vsel %vm196_vm1, %v192_v0, 0.0  ;;  %v198_v3 = vsel %vm196_vm1, %v193_v1, 0.0 }
  0x49   :  { %v199_v4 = vadd.f32 %v198_v3, %v197_v2 }
  0x4b   :  { %200 = vadd.xlane.f32.xlu0 %v199_v4 }
  0xbe   :  { %v201_v5 = vpop.xlane.xlu0 %200 }
  0xbf   :  { %v202_v6 = vrot.slane %v201_v5, 4 }
  0xc1   :  { %v203_v7 = vadd.f32 %v202_v6, %v201_v5 }
  0xc3   :  { %v204_v8 = vrot.slane %v203_v7, 2 }
  0xc5   :  { %v205_v9 = vadd.f32 %v204_v8, %v203_v7 }
  0xc7   :  { %v206_v10 = vrot.slane %v205_v9, 1 }
  0xc9   :  { %v207_v11 = vadd.f32 %v206_v10, %v205_v9 }
  0xcb   :  { %258 = vpush %v207_v11 }
  0xfc   :  { %s259_s30 = spop %258 }
  0xfd   :  { %210 = sst [smem:[#allocation11]] %s259_s30 }
  0xfe   :  { %350 = shalt.err (!%p347_p8)
}
  0xff   :  { %s367_s10 = smov [#allocation11]  }
 0x100   :  { %220 = dma.smem_to_hbm %s367_s10, 16, %s218_s29, [#allocation4]  }
 0x101   :  { %359 = dma.done.wait [#allocation4], 16  }
 0x102   :  { %360 = vsyncadd [#allocation4], 4294967280 }
 0x103   :  { %225 = sfence }
 0x104   :  { %226 = vsyncpa [#allocation3], 1 }
 0x105   :  { %227 = vsyncpa [#allocation7], 1 }
 0x106   :  { %228 = vsyncpa [#allocation4], 1 }
 0x107   :  { %229 = vsyncpa [#allocation5], 1 }
 0x108   :  { %230 = vsyncpa [#allocation10], 1 }

// kernel: tpu_custom_call.1
= control target key start
LH: loop header
LB: loop body
LE: loop exit
PB: predicated region body
PF: predicated region fallthrough
CT: control target
= control target key end

     0   :  { %9 = vsyncpa [#allocation3], 0  ;;  %s394_s0 = inlined_call_operand.hbm [shape: f32[2,4,256], index: 0, kind: input, shape index: {}]   ;;  %s395_s1 = inlined_call_operand.hbm [shape: f32[2,4,256], index: 1, kind: input, shape index: {}]   ;;  %s396_s2 = inlined_call_operand.vmem [shape: f32[1,4], index: 2, kind: input, shape index: {}]   ;;  %s397_s3 = inlined_call_operand.vmem [shape: f32[1,2], index: 3, kind: input, shape index: {}]   ;;  %s398_s4 = inlined_call_operand.hbm [shape: f32[1,1], index: 4, kind: output, shape index: {}]  }
   0x1   :  { %10 = vsyncpa [#allocation7], 0 }
   0x2   :  { %11 = vsyncpa [#allocation5], 0 }
   0x3   :  { %12 = vsyncpa [#allocation10], 0 }
   0x4   :  { %13 = vsyncpa [#allocation4], 0  ;;  %s18_s17 = sshll.u32 %s394_s0, 4  ;;  %s341_s18 = smov [#allocation2]   ;;  %s19_s17 = int_to_ptr.hbm [resolvable:$true] %s18_s17 }
   0x5   :  { %s20_s19 = sshll.u32 %s341_s18, 4  ;;  %s31_s22 = sshll.u32 %s395_s1, 4  ;;  %s21_s19 = int_to_ptr.vmem [resolvable:$true] %s20_s19  ;;  %s32_s22 = int_to_ptr.hbm [resolvable:$true] %s31_s22 }
   0x6   :  { %s342_s23 = smov 128   ;;  %s343_s24 = smov 8  }
   0x7   :  { %26 = dma.hbm_to_vmem [thread:$0]  %s19_s17, 256, %s21_s19, [#allocation3], %s342_s23, %s342_s23, %s343_s24  }
   0x8   :  { %s344_s25 = smov [#allocation6]   ;;  %s45_s29 = sshll.u32 %s396_s2, 4  ;;  %s46_s29 = int_to_ptr.vmem [resolvable:$true] %s45_s29 }
   0x9   :  { %s33_s26 = sshll.u32 %s344_s25, 4  ;;  %s54_s5 = sshll.u32 %s397_s3, 4  ;;  %s34_s26 = int_to_ptr.vmem [resolvable:$true] %s33_s26  ;;  %s55_s5 = int_to_ptr.vmem [resolvable:$true] %s54_s5 }
   0xa   :  { %39 = dma.hbm_to_vmem [thread:$0]  %s32_s22, 256, %s34_s26, [#allocation7], %s342_s23, %s342_s23, %s343_s24  }
   0xb   :  { %s345_s6 = smov [#allocation8]   ;;  %s346_s1 = smov [#allocation9]  }
   0xc   :  { %48 = dma.vmem_to_smem %s46_s29, 16, %s345_s6, [#allocation5]  }
   0xd   :  { %57 = dma.vmem_to_smem %s55_s5, 16, %s346_s1, [#allocation10]  }
   0xe   :  { %331 = dma.done.wait [#allocation3], 256  }
   0xf   :  { %332 = vsyncadd [#allocation3], 4294967040 }
  0x10   :  { %333 = dma.done.wait [#allocation7], 256  }
  0x11   :  { %334 = vsyncadd [#allocation7], 4294967040 }
  0x12   :  { %335 = dma.done.wait [#allocation5], 16  }
  0x13   :  { %336 = vsyncadd [#allocation5], 4294967280 }
  0x14   :  { %337 = dma.done.wait [#allocation10], 16  }
  0x15   :  { %338 = vsyncadd [#allocation10], 4294967280 }
  0x16   :  { %74 = sfence }
  0x17   :  { %s79_s2 = sld [smem:[#allocation8]]  ;;  %v75_v0 = vld [vmem:[#allocation2] sm:$0xff]  ;;  %v76_v1 = vld [vmem:[#allocation2 + $0x8] sm:$0xff]  ;;  %v77_v2 = vld [vmem:[#allocation6] sm:$0xff]  ;;  %vm183_vm0 = vcmask 1041409   ;;  %vm188_vm1 = vcmask 1041408  }
  0x18   :  { %s222_s7 = sld [smem:[#allocation8 + $0x1]]  ;;  %v78_v3 = vld [vmem:[#allocation6 + $0x8] sm:$0xff]  ;;  %s208_s13 = sshll.u32 %s398_s4, 4  ;;  %s209_s13 = int_to_ptr.hbm [resolvable:$true] %s208_s13 }
  0x19   :  { %s227_s8 = sld [smem:[#allocation8 + $0x2]]  ;;  %s347_s15 = smov [#allocation11]  }
  0x1a   :  { %s232_s3 = sld [smem:[#allocation8 + $0x3]] }
  0x1b   :  { %s385_s9 = sld [smem:[#allocation9]] }
  0x1c   :  { %s387_s10 = sld [smem:[#allocation9 + $0x1]] }
  0x1d   :  { %v80_v4 = vstv %s79_s2 }
  0x1e   :  { %v81_v5 = vmul.f32 %v80_v4, %v75_v0  ;;  %v82_v6 = vmul.f32 %v80_v4, %v76_v1  ;;  %v83_v7 = vmul.f32 %v80_v4, %v77_v2  ;;  %v84_v8 = vmul.f32 %v80_v4, %v78_v3 }
  0x1f   :  { %v86_v9 = vstv %s222_s7  ;;  %v112_v10 = vstv %s227_s8 }
  0x20   :  { %v87_v11 = vmul.f32 %v86_v9, %v75_v0  ;;  %v88_v12 = vmul.f32 %v86_v9, %v76_v1  ;;  %v99_v13 = vmul.f32 %v86_v9, %v77_v2  ;;  %v100_v14 = vmul.f32 %v86_v9, %v78_v3 }
  0x21   :  { %v113_v15 = vmul.f32 %v112_v10, %v75_v0  ;;  %v114_v16 = vmul.f32 %v112_v10, %v76_v1  ;;  %v125_v17 = vmul.f32 %v112_v10, %v77_v2  ;;  %v126_v18 = vmul.f32 %v112_v10, %v78_v3 }
  0x22   :  { %v223_v19 = vrot.slane %v87_v11, 9  ;;  %v224_v20 = vrot.slane %v88_v12, 9  ;;  %v225_v21 = vrot.slane %v99_v13, 9  ;;  %v226_v22 = vrot.slane %v100_v14, 9 }
  0x23   :  { %v228_v23 = vrot.slane %v113_v15, 10  ;;  %v229_v24 = vrot.slane %v114_v16, 10  ;;  %v230_v25 = vrot.slane %v125_v17, 10  ;;  %v231_v26 = vrot.slane %v126_v18, 10 }
  0x24   :  { %v97_v27 = vadd.f32 %v223_v19, %v81_v5  ;;  %v98_v28 = vadd.f32 %v224_v20, %v82_v6  ;;  %v109_v29 = vadd.f32 %v225_v21, %v83_v7  ;;  %v110_v30 = vadd.f32 %v226_v22, %v84_v8 }
  0x25   :  { %v138_v31 = vstv %s232_s3  ;;  %v164_v44 = vstv %s385_s9  ;;  %v168_v45 = vstv %s387_s10 }
  0x26   :  { %v123_v32 = vadd.f32 %v228_v23, %v97_v27  ;;  %v124_v33 = vadd.f32 %v229_v24, %v98_v28  ;;  %v135_v34 = vadd.f32 %v230_v25, %v109_v29  ;;  %v136_v35 = vadd.f32 %v231_v26, %v110_v30 }
  0x27   :  { %v139_v36 = vmul.f32 %v138_v31, %v75_v0  ;;  %v140_v37 = vmul.f32 %v138_v31, %v76_v1  ;;  %v151_v38 = vmul.f32 %v138_v31, %v77_v2  ;;  %v152_v39 = vmul.f32 %v138_v31, %v78_v3 }
  0x29   :  { %v233_v40 = vrot.slane %v139_v36, 11  ;;  %v234_v41 = vrot.slane %v140_v37, 11  ;;  %v235_v42 = vrot.slane %v151_v38, 11  ;;  %v236_v43 = vrot.slane %v152_v39, 11 }
  0x2b   :  { %v149_v46 = vadd.f32 %v233_v40, %v123_v32  ;;  %v150_v47 = vadd.f32 %v234_v41, %v124_v33  ;;  %v161_v48 = vadd.f32 %v235_v42, %v135_v34  ;;  %v162_v49 = vadd.f32 %v236_v43, %v136_v35 }
  0x2d   :  { %v165_v50 = vadd.f32 %v164_v44, %v161_v48  ;;  %v166_v51 = vadd.f32 %v164_v44, %v162_v49  ;;  %v169_v52 = vadd.f32 %v168_v45, %v149_v46  ;;  %v170_v53 = vadd.f32 %v168_v45, %v150_v47 }
  0x2f   :  { %v171_v54 = vmul.f32 %v165_v50, %v165_v50  ;;  %v172_v55 = vmul.f32 %v166_v51, %v166_v51  ;;  %v173_v56 = vmul.f32 %v169_v52, %v169_v52  ;;  %v174_v57 = vmul.f32 %v170_v53, %v170_v53 }
  0x31   :  { %v175_v58 = vadd.f32 %v173_v56, %v171_v54  ;;  %v176_v59 = vadd.f32 %v174_v57, %v172_v55 }
  0x33   :  { %v179_v60 = vperm.slane %v175_v58, 0  ;;  %v180_v61 = vperm.slane %v175_v58, 4  ;;  %v181_v62 = vperm.slane %v176_v59, 0  ;;  %v182_v63 = vperm.slane %v176_v59, 4 }
  0x35   :  { %v184_v0 = vsel %vm183_vm0, %v181_v62, %v179_v60  ;;  %v185_v1 = vsel %vm183_vm0, %v182_v63, %v180_v61 }
  0x36   :  { %v189_v2 = vsel %vm188_vm1, %v184_v0, 0.0  ;;  %v190_v3 = vsel %vm188_vm1, %v185_v1, 0.0 }
  0x37   :  { %v191_v4 = vadd.f32 %v190_v3, %v189_v2 }
  0x39   :  { %192 = vadd.xlane.f32.xlu0 %v191_v4 }
  0xac   :  { %v193_v5 = vpop.xlane.xlu0 %192 }
  0xad   :  { %v194_v6 = vrot.slane %v193_v5, 4 }
  0xaf   :  { %v195_v7 = vadd.f32 %v194_v6, %v193_v5 }
  0xb1   :  { %v196_v8 = vrot.slane %v195_v7, 2 }
  0xb3   :  { %v197_v9 = vadd.f32 %v196_v8, %v195_v7 }
  0xb5   :  { %v198_v10 = vrot.slane %v197_v9, 1 }
  0xb7   :  { %v199_v11 = vadd.f32 %v198_v10, %v197_v9 }
  0xb9   :  { %238 = vpush %v199_v11 }
  0xea   :  { %s239_s14 = spop %238 }
  0xeb   :  { %202 = sst [smem:[#allocation11]] %s239_s14 }
  0xec   :  { %211 = dma.smem_to_hbm %s347_s15, 16, %s209_s13, [#allocation4]  }
  0xed   :  { %339 = dma.done.wait [#allocation4], 16  }
  0xee   :  { %340 = vsyncadd [#allocation4], 4294967280 }
  0xef   :  { %216 = sfence }
  0xf0   :  { %217 = vsyncpa [#allocation3], 1 }
  0xf1   :  { %218 = vsyncpa [#allocation7], 1 }
  0xf2   :  { %219 = vsyncpa [#allocation4], 1 }
  0xf3   :  { %220 = vsyncpa [#allocation5], 1 }
  0xf4   :  { %221 = vsyncpa [#allocation10], 1 }

</bundles_post_ra>
